<compile_context>
chip_gen: v7x
topology: tpu7x:2x2x1
jax: 0.10.0
libtpu: 0.0.40
codegen_flags: <defaults>
</compile_context>

<pallas_src>
import functools

import jax
import jax.numpy as jnp
from jax.experimental import pallas as pl
from jax.experimental.pallas import tpu as pltpu

LANE = 128
SUBLANE = 8
ROW_TILE_CAP = 8192           # (8192,128) block: 4 MiB of f32 work per stream
PRED_SENTINEL = -1e9          # sigmoid(PRED_SENTINEL) == 0.0 exactly in f32


def _cdiv(a, b):
    return -(-a // b)


@functools.lru_cache(maxsize=1)
def _tensorcores_per_device():
    """Best-effort detection of chips with 2 TensorCores per JAX device."""
    try:
        kind = str(jax.devices()[0].device_kind).lower()
    except Exception:  # pragma: no cover - defensive
        return 1
    if any(tag in kind for tag in ("v4", "v5p", "v7", "7x")):
        return 2
    return 1


def _choose_layout(rows0):
    """Returns (tile_rows, chunks, steps) with chunks*steps*tile_rows >= rows0."""
    tile = min(ROW_TILE_CAP, rows0)          # rows0 and cap are multiples of 8
    nb = _cdiv(rows0, tile)
    if _tensorcores_per_device() >= 2 and nb >= 2:
        if nb % 2 == 1:
            # Only on dual-core chips: halve the tile once if that yields an
            # even block count so both cores get a private chunk.
            half = max(SUBLANE, (tile // 2) // SUBLANE * SUBLANE)
            if _cdiv(rows0, half) % 2 == 0:
                tile = half
                nb = _cdiv(rows0, tile)
        if nb % 2 == 0:
            return tile, 2, nb // 2
    return tile, 1, nb


def _dice_partial_kernel(rows_ref, pred_ref, true_ref, out_ref, *, tile_rows, coverage):
    """Accumulates per-chunk partial sums into out_ref (shape (3, 8, 128)).

    out[0] += sum(sigmoid(pred) * true)   per (sublane, lane) position
    out[1] += sum(sigmoid(pred))
    out[2] += sum(true)
    """
    c = pl.program_id(0)
    s = pl.program_id(1)

    @pl.when(s == 0)
    def _init():
        out_ref[...] = jnp.zeros_like(out_ref)

    x = pred_ref[...].astype(jnp.float32)
    # sigmoid(x) = 1 / (1 + exp(-x)); exp issues on the EUP slot.  The exact
    # (approx=False) reciprocal keeps the final dice ratio within reference
    # tolerance; approx=True is a v7x VALU-pressure knob if accuracy allows.
    p = pl.reciprocal(1.0 + jnp.exp(-x), approx=False)
    t = true_ref[...].astype(jnp.float32)

    def _accumulate(pv, tv):
        pr = pv.reshape(tile_rows // SUBLANE, SUBLANE, LANE)
        tr = tv.reshape(tile_rows // SUBLANE, SUBLANE, LANE)
        out_ref[0] += jnp.sum(pr * tr, axis=0)   # intersection partials
        out_ref[1] += jnp.sum(pr, axis=0)        # sum(sigmoid(pred))
        out_ref[2] += jnp.sum(tr, axis=0)        # sum(true)

    rows_valid = rows_ref[0]
    is_last = jnp.logical_and(c == pl.num_programs(0) - 1,
                              s == pl.num_programs(1) - 1)
    needs_mask = jnp.logical_and(is_last, rows_valid < coverage)

    @pl.when(needs_mask)
    def _masked():
        # Only the single boundary block (partial last block) pays for the
        # mask, and it is a row-level (sublane) compare, not per-element math.
        row = jax.lax.broadcasted_iota(jnp.int32, (tile_rows, LANE), 0)
        valid = row < (rows_valid - (coverage - tile_rows))
        _accumulate(jnp.where(valid, p, 0.0), jnp.where(valid, t, 0.0))

    @pl.when(jnp.logical_not(needs_mask))
    def _unmasked():
        _accumulate(p, t)


def dice_loss(y_pred, y_true, smooth=1e-6):
    """Pallas implementation of DiceLoss.forward. Returns a scalar f32."""
    if not jnp.issubdtype(y_pred.dtype, jnp.floating):
        y_pred = y_pred.astype(jnp.float32)
    if not jnp.issubdtype(y_true.dtype, jnp.floating):
        y_true = y_true.astype(jnp.float32)

    p = y_pred.reshape(-1)   # native floating dtype; kernel casts on load
    t = y_true.reshape(-1)
    n = p.shape[0]

    chunk = SUBLANE * LANE                       # 1024
    rows0 = _cdiv(n, chunk) * SUBLANE            # rows after minimal 1024-pad
    tile_rows, chunks, steps = _choose_layout(rows0)
    coverage = chunks * steps * tile_rows        # rows covered by the grid

    if n % chunk != 0:
        # A pad copy is unavoidable: pad straight to full grid coverage with
        # the sentinel so the kernel never needs a mask for this case.
        rows_padded = coverage
    else:
        # Aligned numel: no pad copy at all; a partial last block (if any) is
        # handled by the gated row mask inside the kernel.
        rows_padded = rows0
    pad = rows_padded * LANE - n
    if pad:
        p = jnp.pad(p, (0, pad), constant_values=PRED_SENTINEL)
        t = jnp.pad(t, (0, pad))
    p2d = p.reshape(rows_padded, LANE)
    t2d = t.reshape(rows_padded, LANE)
    rows_valid = jnp.array([rows_padded], dtype=jnp.int32)   # SMEM prefetch scalar

    kernel = functools.partial(_dice_partial_kernel,
                               tile_rows=tile_rows, coverage=coverage)

    def in_map(c, s, _rows):
        return (c * steps + s, 0)

    partials = pl.pallas_call(
        kernel,
        out_shape=jax.ShapeDtypeStruct((chunks, 3, SUBLANE, LANE), jnp.float32),
        grid_spec=pltpu.PrefetchScalarGridSpec(
            num_scalar_prefetch=1,
            grid=(chunks, steps),
            in_specs=[
                pl.BlockSpec((tile_rows, LANE), in_map),
                pl.BlockSpec((tile_rows, LANE), in_map),
            ],
            out_specs=pl.BlockSpec((None, 3, SUBLANE, LANE),
                                   lambda c, s, _rows: (c, 0, 0, 0)),
        ),
        compiler_params=pltpu.CompilerParams(
            dimension_semantics=("parallel", "arbitrary"),
            vmem_limit_bytes=40 * 1024 * 1024,
        ),
    )(rows_valid, p2d, t2d)

    # Final tiny combine (<= 2*3*8*128 floats) in the wrapper.
    intersection = jnp.sum(partials[:, 0])
    union = jnp.sum(partials[:, 1]) + jnp.sum(partials[:, 2])
    dice = (2.0 * intersection + smooth) / (union + smooth)
    return 1.0 - dice


def dice_loss_ref(y_pred, y_true, smooth=1e-6):
    """Pure-JAX reference matching the PyTorch module."""
    p = jax.nn.sigmoid(y_pred.astype(jnp.float32)).reshape(-1)
    t = y_true.astype(jnp.float32).reshape(-1)
    intersection = jnp.sum(p * t)
    union = jnp.sum(p) + jnp.sum(t)
    dice = (2.0 * intersection + smooth) / (union + smooth)
    return 1.0 - dice


if __name__ == "__main__":
    key = jax.random.PRNGKey(0)
    loss_fn = jax.jit(dice_loss)

    tests = [
        # primary small NCHW case (aligned: no pad, no mask)
        ((2, 4, 16, 16), jnp.float32),
        # ragged numel -> single sentinel pad copy, zero in-kernel masking
        ((2, 3, 17, 19), jnp.float32),
        # bf16 logits, two full 8192-row blocks (even count -> 2-chunk split on dual-TC chips)
        ((8, 8, 128, 256), jnp.bfloat16),
        # aligned numel with a partial last block -> gated row mask on the boundary block only
        ((5, 8, 128, 256), jnp.float32),
    ]

    ok = True
    for shape, pdt in tests:
        key, k1, k2 = jax.random.split(key, 3)
        y_pred = jax.random.normal(k1, shape, dtype=pdt)
        y_true = (jax.random.uniform(k2, shape) > 0.5).astype(jnp.float32)

        got = jax.block_until_ready(loss_fn(y_pred, y_true))
        want = jax.block_until_ready(dice_loss_ref(y_pred, y_true))
        if not jnp.allclose(got, want, atol=2e-5, rtol=1e-4):
            ok = False
            print("MISMATCH", shape, str(pdt), float(got), float(want))

    if ok:
        print("KERNEL_OK")
</pallas_src>

<mosaic_0001>
module attributes {stable_mosaic.version = 11 : i64} {
  func.func @_dice_partial_kernel(%arg0: i32, %arg1: i32, %arg2: memref<1xi32, #tpu.memory_space<smem>>, %arg3: memref<16x128xf32, #tpu.memory_space<vmem>>, %arg4: memref<16x128xf32, #tpu.memory_space<vmem>>, %arg5: memref<1x3x8x128xf32, #tpu.memory_space<vmem>>) attributes {dimension_semantics = [#tpu.dimension_semantics<parallel>, #tpu.dimension_semantics<arbitrary>], iteration_bounds = array<i64: 1, 1>, scalar_prefetch = 1 : i64, scratch_operands = 0 : i64, tpu.core_type = #tpu.core_type<tc>, window_params = [{transform_indices = @transform_0, window_bounds = array<i64: 16, 128>}, {transform_indices = @transform_1, window_bounds = array<i64: 16, 128>}, {transform_indices = @transform_2, window_bounds = array<i64: 1, 3, 8, 128>}]} {
    %c0_i32 = arith.constant 0 : i32
    %0 = arith.cmpi eq, %arg1, %c0_i32 : i32
    %1 = arith.extui %0 : i1 to i32
    %c0_i32_0 = arith.constant 0 : i32
    %2 = arith.cmpi ne, %1, %c0_i32_0 : i32
    scf.if %2 {
      %cst_10 = arith.constant 0.000000e+00 : f32
      %22 = vector.broadcast %cst_10 : f32 to vector<3x8x128xf32>
      %c0_11 = arith.constant 0 : index
      %c0_12 = arith.constant 0 : index
      %c0_13 = arith.constant 0 : index
      %c0_14 = arith.constant 0 : index
      %23 = vector.load %arg5[%c0_11, %c0_12, %c0_13, %c0_14] : memref<1x3x8x128xf32, #tpu.memory_space<vmem>>, vector<1x3x8x128xf32>
      %24 = vector.shape_cast %23 : vector<1x3x8x128xf32> to vector<3x8x128xf32>
      %25 = vector.shape_cast %22 : vector<3x8x128xf32> to vector<1x3x8x128xf32>
      tpu.vector_store %arg5[%c0_11, %c0_12, %c0_13, %c0_14], %25 {strides = array<i32>} : memref<1x3x8x128xf32, #tpu.memory_space<vmem>>, vector<1x3x8x128xf32>,
    } else {
    }
    %c0 = arith.constant 0 : index
    %c0_1 = arith.constant 0 : index
    %3 = vector.load %arg3[%c0, %c0_1] : memref<16x128xf32, #tpu.memory_space<vmem>>, vector<16x128xf32>
    %cst = arith.constant 0.000000e+00 : f32
    %4 = vector.broadcast %cst : f32 to vector<16x128xf32>
    %5 = arith.subf %4, %3 : vector<16x128xf32>
    %6 = math.exp %5 : vector<16x128xf32>
    %cst_2 = arith.constant 1.000000e+00 : f32
    %7 = vector.broadcast %cst_2 : f32 to vector<16x128xf32>
    %8 = arith.addf %7, %6 : vector<16x128xf32>
    %9 = tpu.reciprocal %8 : vector<16x128xf32> -> vector<16x128xf32>
    %c0_3 = arith.constant 0 : index
    %c0_4 = arith.constant 0 : index
    %10 = vector.load %arg4[%c0_3, %c0_4] : memref<16x128xf32, #tpu.memory_space<vmem>>, vector<16x128xf32>
    %c0_5 = arith.constant 0 : index
    %11 = memref.load %arg2[%c0_5] : memref<1xi32, #tpu.memory_space<smem>>
    %c0_i32_6 = arith.constant 0 : i32
    %12 = arith.cmpi eq, %arg0, %c0_i32_6 : i32
    %c0_i32_7 = arith.constant 0 : i32
    %13 = arith.cmpi eq, %arg1, %c0_i32_7 : i32
    %14 = arith.andi %12, %13 : i1
    %c16_i32 = arith.constant 16 : i32
    %15 = arith.cmpi slt, %11, %c16_i32 : i32
    %16 = arith.andi %14, %15 : i1
    %17 = arith.extui %16 : i1 to i32
    %c0_i32_8 = arith.constant 0 : i32
    %18 = arith.cmpi ne, %17, %c0_i32_8 : i32
    scf.if %18 {
      %22 = tpu.iota {dimensions = array<i32: 0>} : vector<16x128xi32>
      %c0_i32_10 = arith.constant 0 : i32
      %23 = arith.subi %11, %c0_i32_10 : i32
      %24 = vector.broadcast %23 : i32 to vector<16x128xi32>
      %25 = arith.cmpi slt, %22, %24 : vector<16x128xi32>
      %cst_11 = arith.constant 0.000000e+00 : f32
      %26 = vector.broadcast %cst_11 : f32 to vector<16x128xf32>
      %27 = arith.select %25, %9, %26 : vector<16x128xi1>, vector<16x128xf32>
      %cst_12 = arith.constant 0.000000e+00 : f32
      %28 = vector.broadcast %cst_12 : f32 to vector<16x128xf32>
      %29 = arith.select %25, %10, %28 : vector<16x128xi1>, vector<16x128xf32>
      %30 = vector.shape_cast %27 : vector<16x128xf32> to vector<2x8x128xf32>
      %31 = vector.shape_cast %29 : vector<16x128xf32> to vector<2x8x128xf32>
      %c0_13 = arith.constant 0 : index
      %c0_14 = arith.constant 0 : index
      %c0_15 = arith.constant 0 : index
      %c0_16 = arith.constant 0 : index
      %32 = vector.load %arg5[%c0_13, %c0_14, %c0_15, %c0_16] : memref<1x3x8x128xf32, #tpu.memory_space<vmem>>, vector<1x1x8x128xf32>
      %33 = vector.shape_cast %32 : vector<1x1x8x128xf32> to vector<8x128xf32>
      %34 = arith.mulf %30, %31 : vector<2x8x128xf32>
      %cst_17 = arith.constant dense<0.000000e+00> : vector<8x128xf32>
      %35 = vector.multi_reduction <add>, %34, %cst_17 [0] : vector<2x8x128xf32> to vector<8x128xf32>
      %36 = arith.addf %33, %35 : vector<8x128xf32>
      %c0_18 = arith.constant 0 : index
      %c0_19 = arith.constant 0 : index
      %c0_20 = arith.constant 0 : index
      %c0_21 = arith.constant 0 : index
      %37 = vector.load %arg5[%c0_18, %c0_19, %c0_20, %c0_21] : memref<1x3x8x128xf32, #tpu.memory_space<vmem>>, vector<1x1x8x128xf32>
      %38 = vector.shape_cast %37 : vector<1x1x8x128xf32> to vector<8x128xf32>
      %39 = vector.shape_cast %36 : vector<8x128xf32> to vector<1x1x8x128xf32>
      tpu.vector_store %arg5[%c0_18, %c0_19, %c0_20, %c0_21], %39 {strides = array<i32>} : memref<1x3x8x128xf32, #tpu.memory_space<vmem>>, vector<1x1x8x128xf32>,
      %c0_22 = arith.constant 0 : index
      %c1 = arith.constant 1 : index
      %c0_23 = arith.constant 0 : index
      %c0_24 = arith.constant 0 : index
      %40 = vector.load %arg5[%c0_22, %c1, %c0_23, %c0_24] : memref<1x3x8x128xf32, #tpu.memory_space<vmem>>, vector<1x1x8x128xf32>
      %41 = vector.shape_cast %40 : vector<1x1x8x128xf32> to vector<8x128xf32>
      %cst_25 = arith.constant dense<0.000000e+00> : vector<8x128xf32>
      %42 = vector.multi_reduction <add>, %30, %cst_25 [0] : vector<2x8x128xf32> to vector<8x128xf32>
      %43 = arith.addf %41, %42 : vector<8x128xf32>
      %c0_26 = arith.constant 0 : index
      %c1_27 = arith.constant 1 : index
      %c0_28 = arith.constant 0 : index
      %c0_29 = arith.constant 0 : index
      %44 = vector.load %arg5[%c0_26, %c1_27, %c0_28, %c0_29] : memref<1x3x8x128xf32, #tpu.memory_space<vmem>>, vector<1x1x8x128xf32>
      %45 = vector.shape_cast %44 : vector<1x1x8x128xf32> to vector<8x128xf32>
      %46 = vector.shape_cast %43 : vector<8x128xf32> to vector<1x1x8x128xf32>
      tpu.vector_store %arg5[%c0_26, %c1_27, %c0_28, %c0_29], %46 {strides = array<i32>} : memref<1x3x8x128xf32, #tpu.memory_space<vmem>>, vector<1x1x8x128xf32>,
      %c0_30 = arith.constant 0 : index
      %c2 = arith.constant 2 : index
      %c0_31 = arith.constant 0 : index
      %c0_32 = arith.constant 0 : index
      %47 = vector.load %arg5[%c0_30, %c2, %c0_31, %c0_32] : memref<1x3x8x128xf32, #tpu.memory_space<vmem>>, vector<1x1x8x128xf32>
      %48 = vector.shape_cast %47 : vector<1x1x8x128xf32> to vector<8x128xf32>
      %cst_33 = arith.constant dense<0.000000e+00> : vector<8x128xf32>
      %49 = vector.multi_reduction <add>, %31, %cst_33 [0] : vector<2x8x128xf32> to vector<8x128xf32>
      %50 = arith.addf %48, %49 : vector<8x128xf32>
      %c0_34 = arith.constant 0 : index
      %c2_35 = arith.constant 2 : index
      %c0_36 = arith.constant 0 : index
      %c0_37 = arith.constant 0 : index
      %51 = vector.load %arg5[%c0_34, %c2_35, %c0_36, %c0_37] : memref<1x3x8x128xf32, #tpu.memory_space<vmem>>, vector<1x1x8x128xf32>
      %52 = vector.shape_cast %51 : vector<1x1x8x128xf32> to vector<8x128xf32>
      %53 = vector.shape_cast %50 : vector<8x128xf32> to vector<1x1x8x128xf32>
      tpu.vector_store %arg5[%c0_34, %c2_35, %c0_36, %c0_37], %53 {strides = array<i32>} : memref<1x3x8x128xf32, #tpu.memory_space<vmem>>, vector<1x1x8x128xf32>,
    } else {
    }
    %true = arith.constant true
    %19 = arith.xori %16, %true : i1
    %20 = arith.extui %19 : i1 to i32
    %c0_i32_9 = arith.constant 0 : i32
    %21 = arith.cmpi ne, %20, %c0_i32_9 : i32
    scf.if %21 {
      %22 = vector.shape_cast %9 : vector<16x128xf32> to vector<2x8x128xf32>
      %23 = vector.shape_cast %10 : vector<16x128xf32> to vector<2x8x128xf32>
      %c0_10 = arith.constant 0 : index
      %c0_11 = arith.constant 0 : index
      %c0_12 = arith.constant 0 : index
      %c0_13 = arith.constant 0 : index
      %24 = vector.load %arg5[%c0_10, %c0_11, %c0_12, %c0_13] : memref<1x3x8x128xf32, #tpu.memory_space<vmem>>, vector<1x1x8x128xf32>
      %25 = vector.shape_cast %24 : vector<1x1x8x128xf32> to vector<8x128xf32>
      %26 = arith.mulf %22, %23 : vector<2x8x128xf32>
      %cst_14 = arith.constant dense<0.000000e+00> : vector<8x128xf32>
      %27 = vector.multi_reduction <add>, %26, %cst_14 [0] : vector<2x8x128xf32> to vector<8x128xf32>
      %28 = arith.addf %25, %27 : vector<8x128xf32>
      %c0_15 = arith.constant 0 : index
      %c0_16 = arith.constant 0 : index
      %c0_17 = arith.constant 0 : index
      %c0_18 = arith.constant 0 : index
      %29 = vector.load %arg5[%c0_15, %c0_16, %c0_17, %c0_18] : memref<1x3x8x128xf32, #tpu.memory_space<vmem>>, vector<1x1x8x128xf32>
      %30 = vector.shape_cast %29 : vector<1x1x8x128xf32> to vector<8x128xf32>
      %31 = vector.shape_cast %28 : vector<8x128xf32> to vector<1x1x8x128xf32>
      tpu.vector_store %arg5[%c0_15, %c0_16, %c0_17, %c0_18], %31 {strides = array<i32>} : memref<1x3x8x128xf32, #tpu.memory_space<vmem>>, vector<1x1x8x128xf32>,
      %c0_19 = arith.constant 0 : index
      %c1 = arith.constant 1 : index
      %c0_20 = arith.constant 0 : index
      %c0_21 = arith.constant 0 : index
      %32 = vector.load %arg5[%c0_19, %c1, %c0_20, %c0_21] : memref<1x3x8x128xf32, #tpu.memory_space<vmem>>, vector<1x1x8x128xf32>
      %33 = vector.shape_cast %32 : vector<1x1x8x128xf32> to vector<8x128xf32>
      %cst_22 = arith.constant dense<0.000000e+00> : vector<8x128xf32>
      %34 = vector.multi_reduction <add>, %22, %cst_22 [0] : vector<2x8x128xf32> to vector<8x128xf32>
      %35 = arith.addf %33, %34 : vector<8x128xf32>
      %c0_23 = arith.constant 0 : index
      %c1_24 = arith.constant 1 : index
      %c0_25 = arith.constant 0 : index
      %c0_26 = arith.constant 0 : index
      %36 = vector.load %arg5[%c0_23, %c1_24, %c0_25, %c0_26] : memref<1x3x8x128xf32, #tpu.memory_space<vmem>>, vector<1x1x8x128xf32>
      %37 = vector.shape_cast %36 : vector<1x1x8x128xf32> to vector<8x128xf32>
      %38 = vector.shape_cast %35 : vector<8x128xf32> to vector<1x1x8x128xf32>
      tpu.vector_store %arg5[%c0_23, %c1_24, %c0_25, %c0_26], %38 {strides = array<i32>} : memref<1x3x8x128xf32, #tpu.memory_space<vmem>>, vector<1x1x8x128xf32>,
      %c0_27 = arith.constant 0 : index
      %c2 = arith.constant 2 : index
      %c0_28 = arith.constant 0 : index
      %c0_29 = arith.constant 0 : index
      %39 = vector.load %arg5[%c0_27, %c2, %c0_28, %c0_29] : memref<1x3x8x128xf32, #tpu.memory_space<vmem>>, vector<1x1x8x128xf32>
      %40 = vector.shape_cast %39 : vector<1x1x8x128xf32> to vector<8x128xf32>
      %cst_30 = arith.constant dense<0.000000e+00> : vector<8x128xf32>
      %41 = vector.multi_reduction <add>, %23, %cst_30 [0] : vector<2x8x128xf32> to vector<8x128xf32>
      %42 = arith.addf %40, %41 : vector<8x128xf32>
      %c0_31 = arith.constant 0 : index
      %c2_32 = arith.constant 2 : index
      %c0_33 = arith.constant 0 : index
      %c0_34 = arith.constant 0 : index
      %43 = vector.load %arg5[%c0_31, %c2_32, %c0_33, %c0_34] : memref<1x3x8x128xf32, #tpu.memory_space<vmem>>, vector<1x1x8x128xf32>
      %44 = vector.shape_cast %43 : vector<1x1x8x128xf32> to vector<8x128xf32>
      %45 = vector.shape_cast %42 : vector<8x128xf32> to vector<1x1x8x128xf32>
      tpu.vector_store %arg5[%c0_31, %c2_32, %c0_33, %c0_34], %45 {strides = array<i32>} : memref<1x3x8x128xf32, #tpu.memory_space<vmem>>, vector<1x1x8x128xf32>,
    } else {
    }
    return
  }
  func.func @transform_0(%arg0: i32, %arg1: i32, %arg2: memref<1xi32, #tpu.memory_space<smem>>) -> (i32, i32) {
    %c1_i32 = arith.constant 1 : i32
    %0 = arith.muli %arg0, %c1_i32 : i32
    %1 = arith.addi %0, %arg1 : i32
    %c0_i32 = arith.constant 0 : i32
    %c0_i32_0 = arith.constant 0 : i32
    return %1, %c0_i32 : i32, i32
  }
  func.func @transform_1(%arg0: i32, %arg1: i32, %arg2: memref<1xi32, #tpu.memory_space<smem>>) -> (i32, i32) {
    %c1_i32 = arith.constant 1 : i32
    %0 = arith.muli %arg0, %c1_i32 : i32
    %1 = arith.addi %0, %arg1 : i32
    %c0_i32 = arith.constant 0 : i32
    %c0_i32_0 = arith.constant 0 : i32
    return %1, %c0_i32 : i32, i32
  }
  func.func @transform_2(%arg0: i32, %arg1: i32, %arg2: memref<1xi32, #tpu.memory_space<smem>>) -> (i32, i32, i32, i32) {
    %c0_i32 = arith.constant 0 : i32
    %c0_i32_0 = arith.constant 0 : i32
    %c0_i32_1 = arith.constant 0 : i32
    %c0_i32_2 = arith.constant 0 : i32
    return %arg0, %c0_i32, %c0_i32_0, %c0_i32_1 : i32, i32, i32, i32
  }
}

</mosaic_0001>

<bundles_post_ra>
// kernel: dice_loss.1
= control target key start
LH: loop header
LB: loop body
LE: loop exit
PB: predicated region body
PF: predicated region fallthrough
CT: control target
= control target key end

     0   :  { %v167_v0 = vmov 0.0   ;;  %s259_s0 = inlined_call_operand.<no memory space> [shape: s32[1], index: 0, kind: input, shape index: {}]   ;;  %s260_s1 = inlined_call_operand.vmem [shape: f32[16,128], index: 1, kind: input, shape index: {}]   ;;  %s261_s2 = inlined_call_operand.vmem [shape: f32[16,128], index: 2, kind: input, shape index: {}]   ;;  %s262_s3 = inlined_call_operand.vmem [shape: f32[1,3,8,128], index: 3, kind: output, shape index: {}]  }
   0x1   :  { %61 = vst [vmem:[%s262_s3] sm:$0xff] %v167_v0  ;;  %62 = vst [vmem:[%s262_s3 + $0x8] sm:$0xff] %v167_v0  ;;  %v64_v1 = vld [vmem:[%s260_s1] sm:$0xff]  ;;  %v65_v2 = vld [vmem:[%s260_s1 + $0x8] sm:$0xff]  ;;  %p82_p0 = scmp.lt.s32.totalorder %s259_s0, 16 }
   0x2   :  { %63 = vst [vmem:[%s262_s3 + $0x10] sm:$0xff] %v167_v0  ;;  %v76_v3 = vld [vmem:[%s261_s2] sm:$0xff]  ;;  %v66_v4 = vsub.f32 0.0, %v64_v1  ;;  %v67_v5 = vsub.f32 0.0, %v65_v2  ;;  %v77_v6 = vld [vmem:[%s261_s2 + $0x8] sm:$0xff]  ;;  %v87_v15 = vlaneseq (%p82_p0)  ;;  %v90_v16 = vstv (%p82_p0), %s259_s0 }
   0x4   :  { %v68_v7 = vmul.f32 1.442695, %v66_v4  ;;  %v70_v8 = vmul.f32 1.442695, %v67_v5  ;;  %v88_v17 = vshrl.u32 (%p82_p0), %v87_v15, 7 }
   0x6   :  { %159 = vpow2.f32 %v68_v7  ;;  %v89_v18 = vadd.s32 (%p82_p0), 8, %v88_v17  ;;  %vm91_vm0 = vcmp.lt.s32.totalorder (%p82_p0), %v88_v17, %v90_v16 }
   0x7   :  { %161 = vpow2.f32 %v70_v8  ;;  %v95_v20 = vsel (%p82_p0), %vm91_vm0, %v76_v3, 0.0 }
   0x8   :  { %vm92_vm1 = vcmp.lt.s32.totalorder (%p82_p0), %v89_v18, %v90_v16  ;;  %v149_v24 = vld [vmem:[%s262_s3 + $0x8] sm:$0xff] (%p82_p0)  ;;  %v97_v29 = vld [vmem:[%s262_s3] sm:$0xff] (%p82_p0) }
   0x9   :  { %v96_v23 = vsel (%p82_p0), %vm92_vm1, %v77_v6, 0.0  ;;  %v151_v25 = vld [vmem:[%s262_s3 + $0x10] sm:$0xff] (%p82_p0) }
   0xa   :  { %v110_v28 = vadd.f32 (%p82_p0), %v96_v23, %v95_v20 }
   0xc   :  { %v111_v32 = vadd.f32 (%p82_p0), %v151_v25, %v110_v28 }
   0xe   :  { %152 = vst [vmem:[%s262_s3 + $0x10] sm:$0xff] (%p82_p0), %v111_v32 }
  0x10   :  { %v160_v9 = vpop.eup %159 }
  0x11   :  { %v162_v10 = vpop.eup %161  ;;  %v72_v11 = vadd.f32 1.0, %v160_v9 }
  0x12   :  { %v73_v12 = vadd.f32 1.0, %v162_v10 }
  0x13   :  { %163 = vrcp.f32 %v72_v11 }
  0x14   :  { %165 = vrcp.f32 %v73_v12 }
  0x18   :  { %86 = sbr.rel (!%p82_p0) target bundleno = 39 (0x27), region = 17 }
  0x1d   :  { %v164_v13 = vpop.eup %163 }
  0x1e   :  { %v166_v14 = vpop.eup %165  ;;  %v93_v19 = vsel (%p82_p0), %vm91_vm0, %v164_v13, 0.0 }
  0x1f   :  { %v98_v21 = vmul.f32 %v95_v20, %v93_v19  ;;  %v94_v22 = vsel %vm92_vm1, %v166_v14, 0.0 }
  0x20   :  { %v99_v26 = vmul.f32 %v96_v23, %v94_v22  ;;  %v105_v27 = vadd.f32 %v94_v22, %v93_v19 }
  0x22   :  { %v100_v30 = vadd.f32 %v99_v26, %v98_v21  ;;  %v106_v31 = vadd.f32 %v149_v24, %v105_v27 }
  0x24   :  { %v101_v33 = vadd.f32 %v100_v30, %v97_v29  ;;  %150 = vst [vmem:[%s262_s3 + $0x8] sm:$0xff] %v106_v31 }
  0x26   :  { %102 = vst [vmem:[%s262_s3] sm:$0xff] %v101_v33 }
  0x27 PF:  { %115 = sbr.rel (%p82_p0) target bundleno = 49 (0x31), region = 21  ;;  %v117_v34 = vmul.f32 (!%p82_p0), %v164_v13, %v76_v3  ;;  %v118_v35 = vmul.f32 (!%p82_p0), %v166_v14, %v77_v6  ;;  %v124_v37 = vadd.f32 (!%p82_p0), %v166_v14, %v164_v13  ;;  %v155_v38 = vld [vmem:[%s262_s3 + $0x10] sm:$0xff] (!%p82_p0)  ;;  %v129_v39 = vadd.f32 (!%p82_p0), %v77_v6, %v76_v3 }
  0x29   :  { %v119_v41 = vadd.f32 (!%p82_p0), %v118_v35, %v117_v34  ;;  %v130_v43 = vadd.f32 (!%p82_p0), %v155_v38, %v129_v39 }
  0x2b   :  { %v153_v36 = vld [vmem:[%s262_s3 + $0x8] sm:$0xff] (!%p82_p0)  ;;  %156 = vst [vmem:[%s262_s3 + $0x10] sm:$0xff] (!%p82_p0), %v130_v43 }
  0x2c   :  { %v125_v42 = vadd.f32 (!%p82_p0), %v153_v36, %v124_v37 }
  0x2d   :  { %v116_v40 = vld [vmem:[%s262_s3] sm:$0xff] (!%p82_p0) }
  0x2e   :  { %v120_v44 = vadd.f32 %v119_v41, %v116_v40  ;;  %154 = vst [vmem:[%s262_s3 + $0x8] sm:$0xff] %v125_v42 }
  0x30   :  { %121 = vst [vmem:[%s262_s3] sm:$0xff] %v120_v44 }
  0x31 PF:  {}

</bundles_post_ra>
